<compile_context>
chip_gen: v7x
topology: tpu7x:2x2x1
jax: 0.10.0
libtpu: 0.0.40
codegen_flags: <defaults>
</compile_context>

<pallas_src>
import functools

import jax
import jax.numpy as jnp
import numpy as np
from jax.experimental import pallas as pl
from jax.experimental.pallas import tpu as pltpu


def _aue_kernel(pred_ref, labels_ref, out_ref, *, a, q, n_total, use_int_pow):
    # pred_ref:   (C, R, 128) logits tile in VMEM (native dtype)
    # labels_ref: (R, 128) int32 class indices
    # out_ref:    (1, 8, 128) f32 per-tile partial sums (disjoint per grid step)
    i = pl.program_id(0)

    pred = pred_ref[...].astype(jnp.float32)              # (C, R, 128)
    labels = labels_ref[...]                               # (R, 128) int32
    c, r, lanes = pred.shape

    # Compare-based label selection (no one-hot float tensor, no gather).
    class_ids = jax.lax.broadcasted_iota(jnp.int32, (c, r, lanes), 0)
    lbl_mask = class_ids == labels[None]                   # (C, R, 128) bool

    # Numerically-stable softmax probability of the true class only.
    # Class reductions are over the leading (un-tiled) axis -> cheap vreg ops.
    row_max = jnp.max(pred, axis=0)                         # (R, 128)
    ez = jnp.exp(pred - row_max[None])                      # (C, R, 128)  EUP
    se = jnp.sum(ez, axis=0)                                # (R, 128)
    ez_lbl = jnp.sum(jnp.where(lbl_mask, ez, 0.0), axis=0)  # (R, 128)
    p_label = ez_lbl / se                                   # (R, 128)

    # AUE: ((a - p)^q - (a-1)^q) / q
    x = a - p_label                                         # > 0 when a > 1
    if use_int_pow:
        xq = jax.lax.integer_pow(x, int(q))                 # matches torch.pow for integral q
    else:
        xq = jnp.exp(q * jnp.log(x))                        # EUP; NaN for x<=0 (same as torch)
    per_sample = (xq - (a - 1.0) ** q) * (1.0 / q)          # (R, 128)

    # Mask padded tail samples so they don't pollute the sum.
    samp_idx = (i * (r * lanes)
                + jax.lax.broadcasted_iota(jnp.int32, (r, lanes), 0) * lanes
                + jax.lax.broadcasted_iota(jnp.int32, (r, lanes), 1))
    per_sample = jnp.where(samp_idx < n_total, per_sample, 0.0)

    # (R,128) -> (R/8, 8, 128) is layout-preserving; sum over leading axis.
    partial = jnp.sum(per_sample.reshape(r // 8, 8, lanes), axis=0)   # (8, 128)
    out_ref[...] = partial[None]


def _vmem_capacity_bytes():
    try:
        cap = int(pltpu.get_tpu_info().vmem_capacity_bytes)
        if cap > 0:
            return cap
    except Exception:
        pass
    return 64 * 1024 * 1024   # conservative fallback: v7x per-TC VMEM


def _choose_rows_per_tile(n, c, itemsize, sublane, vmem_budget, max_rows=None):
    lane = 128
    # Resident VMEM per 128-sample "row":
    #   logits input block, double-buffered : 2 * C * lane * itemsize
    #   labels input block, double-buffered : 2 * lane * 4
    #   (C,R,128) f32 temporaries (~5)      : 5 * C * lane * 4
    #   (R,128)   f32 temporaries (~6)      : 6 * lane * 4
    bytes_per_row = (2 * c * lane * itemsize + 2 * lane * 4
                     + 5 * c * lane * 4 + 6 * lane * 4)
    rows = max(sublane, vmem_budget // bytes_per_row)
    rows_needed = pl.cdiv(n, lane)
    rows_needed = pl.cdiv(rows_needed, sublane) * sublane
    rows = min(rows, rows_needed, 2048)
    if max_rows is not None:
        rows = min(rows, max_rows)
    rows = max(sublane, (rows // sublane) * sublane)
    return int(rows)


def aue_loss(pred, labels, num_classes=None, a=1.5, q=0.9, max_rows_per_tile=None):
    """pred: [N, C] logits (any float dtype); labels: [N] int -> scalar loss."""
    n, c = pred.shape
    if num_classes is not None and num_classes != c:
        raise ValueError("num_classes must match pred.shape[1]")
    a = float(a)
    q = float(q)
    use_int_pow = q == int(q)
    # NOTE: for fractional q the pow is exp(q*log(a - p)); it assumes a > 1
    # (same NaN behavior as torch.pow of a negative base otherwise).

    itemsize = pred.dtype.itemsize
    sublane = max(8, 32 // itemsize)            # 8 f32 / 16 bf16 / 32 int8,fp8
    cap = _vmem_capacity_bytes()
    vmem_budget = (cap * 3) // 8                # ~24 MiB v7x, ~48 MiB v5e/v6e
    vmem_limit = int(min(cap, vmem_budget + 8 * 1024 * 1024))

    rows = _choose_rows_per_tile(n, c, itemsize, sublane, vmem_budget,
                                 max_rows_per_tile)
    tile_n = rows * 128
    num_tiles = pl.cdiv(n, tile_n)
    n_pad = num_tiles * tile_n

    labels_i = labels.astype(jnp.int32)
    if n_pad != n:
        pred_p = jnp.pad(pred, ((0, n_pad - n), (0, 0)))
        labels_p = jnp.pad(labels_i, (0, n_pad - n))
    else:
        pred_p, labels_p = pred, labels_i

    # Lane-dense layout: classes -> leading (un-tiled) dim, batch -> (sublane, lane).
    pred_t = pred_p.T.reshape(c, n_pad // 128, 128)          # dense, 0 lane padding
    labels_t = labels_p.reshape(n_pad // 128, 128)           # 4 B / sample

    kernel = functools.partial(_aue_kernel, a=a, q=q, n_total=n,
                               use_int_pow=use_int_pow)

    cost = pl.CostEstimate(
        flops=int(8 * n_pad * c + 12 * n_pad),
        transcendentals=int(n_pad * c + 2 * n_pad),
        bytes_accessed=int(pred_t.size * itemsize + labels_t.size * 4
                           + num_tiles * 8 * 128 * 4),
    )

    partials = pl.pallas_call(
        kernel,
        out_shape=jax.ShapeDtypeStruct((num_tiles, 8, 128), jnp.float32),
        grid=(num_tiles,),
        in_specs=[
            pl.BlockSpec((c, rows, 128), lambda i: (0, i, 0)),   # logits tile
            pl.BlockSpec((rows, 128), lambda i: (i, 0)),         # labels tile
        ],
        out_specs=pl.BlockSpec((1, 8, 128), lambda i: (i, 0, 0)),  # per-tile partials
        compiler_params=pltpu.CompilerParams(
            dimension_semantics=("parallel",),   # disjoint outputs -> dual-TC on v7x
            vmem_limit_bytes=vmem_limit,
        ),
        cost_estimate=cost,
    )(pred_t, labels_t)

    return jnp.sum(partials) / n                 # mean over the true N


def _reference(pred, labels, num_classes, a=1.5, q=0.9):
    # Pure-JAX mirror of the PyTorch AUELoss.forward.
    probs = jax.nn.softmax(pred.astype(jnp.float32), axis=1)
    onehot = jax.nn.one_hot(labels, num_classes, dtype=jnp.float32)
    p_label = jnp.sum(onehot * probs, axis=1)
    loss = (jnp.power(a - p_label, q) - (a - 1.0) ** q) / q
    return jnp.mean(loss)


if __name__ == "__main__":
    key = jax.random.PRNGKey(0)
    k1, k2, k3, k4 = jax.random.split(key, 4)

    # Case 1: f32 logits, module default num_classes=10; exercises tail masking.
    N1, C1 = 300, 10
    pred1 = jax.random.normal(k1, (N1, C1), dtype=jnp.float32) * 2.0
    labels1 = jax.random.randint(k2, (N1,), 0, C1, dtype=jnp.int32)
    out1 = jax.block_until_ready(aue_loss(pred1, labels1, num_classes=C1))
    ref1 = _reference(pred1, labels1, C1)
    assert np.allclose(np.asarray(out1), np.asarray(ref1), rtol=2e-5, atol=2e-5), (out1, ref1)

    # Case 2: bf16 logits, forced small tiles -> multi-tile grid + tail masking,
    # non-default (a, q).
    N2, C2 = 2500, 10
    pred2 = (jax.random.normal(k3, (N2, C2), dtype=jnp.float32) * 3.0).astype(jnp.bfloat16)
    labels2 = jax.random.randint(k4, (N2,), 0, C2, dtype=jnp.int32)
    out2 = jax.block_until_ready(
        aue_loss(pred2, labels2, num_classes=C2, a=2.0, q=0.7, max_rows_per_tile=16))
    ref2 = _reference(pred2, labels2, C2, a=2.0, q=0.7)
    assert np.allclose(np.asarray(out2), np.asarray(ref2), rtol=2e-4, atol=2e-4), (out2, ref2)

    print("KERNEL_OK")
</pallas_src>

<mosaic_0001>
module attributes {stable_mosaic.version = 11 : i64} {
  func.func @_aue_kernel(%arg0: i32, %arg1: memref<10x8x128xf32, #tpu.memory_space<vmem>>, %arg2: memref<8x128xi32, #tpu.memory_space<vmem>>, %arg3: memref<1x8x128xf32, #tpu.memory_space<vmem>>) attributes {dimension_semantics = [#tpu.dimension_semantics<parallel>], iteration_bounds = array<i64: 1>, scalar_prefetch = 0 : i64, scratch_operands = 0 : i64, tpu.core_type = #tpu.core_type<tc>, window_params = [{transform_indices = @transform_0, window_bounds = array<i64: 10, 8, 128>}, {transform_indices = @transform_1, window_bounds = array<i64: 8, 128>}, {transform_indices = @transform_2, window_bounds = array<i64: 1, 8, 128>}]} {
    %c0 = arith.constant 0 : index
    %c0_0 = arith.constant 0 : index
    %c0_1 = arith.constant 0 : index
    %0 = vector.load %arg1[%c0, %c0_0, %c0_1] : memref<10x8x128xf32, #tpu.memory_space<vmem>>, vector<10x8x128xf32>
    %c0_2 = arith.constant 0 : index
    %c0_3 = arith.constant 0 : index
    %1 = vector.load %arg2[%c0_2, %c0_3] : memref<8x128xi32, #tpu.memory_space<vmem>>, vector<8x128xi32>
    %2 = tpu.iota {dimensions = array<i32: 0>} : vector<10x8x128xi32>
    %3 = vector.shape_cast %1 : vector<8x128xi32> to vector<1x8x128xi32>
    %4 = vector.broadcast %3 : vector<1x8x128xi32> to vector<10x8x128xi32>
    %5 = arith.cmpi eq, %2, %4 : vector<10x8x128xi32>
    %cst = arith.constant dense<0xFF800000> : vector<8x128xf32>
    %6 = vector.multi_reduction <maximumf>, %0, %cst [0] : vector<10x8x128xf32> to vector<8x128xf32>
    %7 = vector.shape_cast %6 : vector<8x128xf32> to vector<1x8x128xf32>
    %8 = vector.broadcast %7 : vector<1x8x128xf32> to vector<10x8x128xf32>
    %9 = arith.subf %0, %8 : vector<10x8x128xf32>
    %10 = math.exp %9 : vector<10x8x128xf32>
    %cst_4 = arith.constant dense<0.000000e+00> : vector<8x128xf32>
    %11 = vector.multi_reduction <add>, %10, %cst_4 [0] : vector<10x8x128xf32> to vector<8x128xf32>
    %cst_5 = arith.constant 0.000000e+00 : f32
    %12 = vector.broadcast %cst_5 : f32 to vector<10x8x128xf32>
    %13 = arith.select %5, %10, %12 : vector<10x8x128xi1>, vector<10x8x128xf32>
    %cst_6 = arith.constant dense<0.000000e+00> : vector<8x128xf32>
    %14 = vector.multi_reduction <add>, %13, %cst_6 [0] : vector<10x8x128xf32> to vector<8x128xf32>
    %15 = arith.divf %14, %11 : vector<8x128xf32>
    %cst_7 = arith.constant 1.500000e+00 : f32
    %16 = vector.broadcast %cst_7 : f32 to vector<8x128xf32>
    %17 = arith.subf %16, %15 : vector<8x128xf32>
    %18 = math.log %17 : vector<8x128xf32>
    %cst_8 = arith.constant 0.899999976 : f32
    %19 = vector.broadcast %cst_8 : f32 to vector<8x128xf32>
    %20 = arith.mulf %19, %18 : vector<8x128xf32>
    %21 = math.exp %20 : vector<8x128xf32>
    %cst_9 = arith.constant 0.535886705 : f32
    %22 = vector.broadcast %cst_9 : f32 to vector<8x128xf32>
    %23 = arith.subf %21, %22 : vector<8x128xf32>
    %cst_10 = arith.constant 1.11111116 : f32
    %24 = vector.broadcast %cst_10 : f32 to vector<8x128xf32>
    %25 = arith.mulf %23, %24 : vector<8x128xf32>
    %c1024_i32 = arith.constant 1024 : i32
    %26 = arith.muli %arg0, %c1024_i32 : i32
    %27 = tpu.iota {dimensions = array<i32: 0>} : vector<8x128xi32>
    %c128_i32 = arith.constant 128 : i32
    %28 = vector.broadcast %c128_i32 : i32 to vector<8x128xi32>
    %29 = arith.muli %27, %28 : vector<8x128xi32>
    %30 = vector.broadcast %26 : i32 to vector<8x128xi32>
    %31 = arith.addi %30, %29 : vector<8x128xi32>
    %32 = tpu.iota {dimensions = array<i32: 1>} : vector<8x128xi32>
    %33 = arith.addi %31, %32 : vector<8x128xi32>
    %c300_i32 = arith.constant 300 : i32
    %34 = vector.broadcast %c300_i32 : i32 to vector<8x128xi32>
    %35 = arith.cmpi slt, %33, %34 : vector<8x128xi32>
    %cst_11 = arith.constant 0.000000e+00 : f32
    %36 = vector.broadcast %cst_11 : f32 to vector<8x128xf32>
    %37 = arith.select %35, %25, %36 : vector<8x128xi1>, vector<8x128xf32>
    %38 = vector.shape_cast %37 : vector<8x128xf32> to vector<1x8x128xf32>
    %cst_12 = arith.constant dense<0.000000e+00> : vector<8x128xf32>
    %39 = vector.multi_reduction <add>, %38, %cst_12 [0] : vector<1x8x128xf32> to vector<8x128xf32>
    %40 = vector.shape_cast %39 : vector<8x128xf32> to vector<1x8x128xf32>
    %c0_13 = arith.constant 0 : index
    %c0_14 = arith.constant 0 : index
    %c0_15 = arith.constant 0 : index
    %41 = vector.load %arg3[%c0_13, %c0_14, %c0_15] : memref<1x8x128xf32, #tpu.memory_space<vmem>>, vector<1x8x128xf32>
    tpu.vector_store %arg3[%c0_13, %c0_14, %c0_15], %40 {strides = array<i32>} : memref<1x8x128xf32, #tpu.memory_space<vmem>>, vector<1x8x128xf32>,
    return
  }
  func.func @transform_0(%arg0: i32) -> (i32, i32, i32) {
    %c0_i32 = arith.constant 0 : i32
    %c0_i32_0 = arith.constant 0 : i32
    %c0_i32_1 = arith.constant 0 : i32
    return %c0_i32, %arg0, %c0_i32_0 : i32, i32, i32
  }
  func.func @transform_1(%arg0: i32) -> (i32, i32) {
    %c0_i32 = arith.constant 0 : i32
    %c0_i32_0 = arith.constant 0 : i32
    return %arg0, %c0_i32 : i32, i32
  }
  func.func @transform_2(%arg0: i32) -> (i32, i32, i32) {
    %c0_i32 = arith.constant 0 : i32
    %c0_i32_0 = arith.constant 0 : i32
    %c0_i32_1 = arith.constant 0 : i32
    return %arg0, %c0_i32, %c0_i32_0 : i32, i32, i32
  }
}

</mosaic_0001>

<bundles_post_ra>
// kernel: tpu_custom_call.1
= control target key start
LH: loop header
LB: loop body
LE: loop exit
PB: predicated region body
PF: predicated region fallthrough
CT: control target
= control target key end

     0   :  { %7 = vsyncpa [#allocation3], 0  ;;  %s325_s0 = inlined_call_operand.hbm [shape: f32[10,8,128], index: 0, kind: input, shape index: {}]   ;;  %s326_s1 = inlined_call_operand.hbm [shape: s32[8,128], index: 1, kind: input, shape index: {}]   ;;  %s327_s2 = inlined_call_operand.hbm [shape: f32[1,8,128], index: 2, kind: output, shape index: {}]  }
   0x1   :  { %8 = vsyncpa [#allocation6], 0 }
   0x2   :  { %9 = vsyncpa [#allocation4], 0  ;;  %s269_s9 = smov [#allocation2]   ;;  %s197_s13 = scalar_lea.hbm %s325_s0, 1280 }
   0x3   :  { %s15_s10 = sshll.u32 %s269_s9, 4  ;;  %p198_p0 = scmp.ne.s32.totalorder %s325_s0, %s197_s13  ;;  %s16_s10 = int_to_ptr.vmem [resolvable:$true] %s15_s10 }
   0x4   :  { %p201_p1 = scmp.lt.u32.totalorder %s197_s13, %s325_s0 }
   0x6   :  { %p203_p2 = pnand %p201_p1, %p198_p0 }
   0x8   :  { %206 = shalt.err (!%p203_p2)
}
   0x9   :  { %s207_s18 = scalar_lea.vmem %s16_s10, 1280  ;;  %p212_p4 = scmp.lt.s32.totalorder %s16_s10, %s16_s10 }
   0xa   :  { %p208_p3 = scmp.ne.s32.totalorder %s16_s10, %s207_s18  ;;  %p213_p5 = scmp.lt.s32.totalorder %s207_s18, %s207_s18 }
   0xc   :  { %p214_p6 = por %p213_p5, %p212_p4 }
   0xe   :  { %p215_p7 = pnand %p214_p6, %p208_p3 }
  0x10   :  { %218 = shalt.err (!%p215_p7)
}
  0x11   :  { %s270_s19 = smov 128   ;;  %s271_s20 = smov 8  }
  0x12   :  { %21 = dma.hbm_to_vmem [thread:$0]  %s325_s0, 1280, %s16_s10, [#allocation3], %s270_s19, %s270_s19, %s271_s20  }
  0x13   :  { %s272_s23 = smov [#allocation5]   ;;  %s219_s27 = scalar_lea.hbm %s326_s1, 128 }
  0x14   :  { %s28_s24 = sshll.u32 %s272_s23, 4  ;;  %p220_p8 = scmp.ne.s32.totalorder %s326_s1, %s219_s27  ;;  %s29_s24 = int_to_ptr.vmem [resolvable:$true] %s28_s24 }
  0x15   :  { %p223_p9 = scmp.lt.u32.totalorder %s219_s27, %s326_s1 }
  0x17   :  { %p225_p10 = pnand %p223_p9, %p220_p8 }
  0x19   :  { %228 = shalt.err (!%p225_p10)
}
  0x1a   :  { %s229_s4 = scalar_lea.vmem %s29_s24, 128  ;;  %p234_p12 = scmp.lt.s32.totalorder %s29_s24, %s29_s24 }
  0x1b   :  { %p230_p11 = scmp.ne.s32.totalorder %s29_s24, %s229_s4  ;;  %p235_p13 = scmp.lt.s32.totalorder %s229_s4, %s229_s4 }
  0x1d   :  { %p236_p0 = por %p235_p13, %p234_p12 }
  0x1f   :  { %p237_p1 = pnand %p236_p0, %p230_p11 }
  0x21   :  { %240 = shalt.err (!%p237_p1)
}
  0x22   :  { %31 = dma.hbm_to_vmem [thread:$0]  %s326_s1, 128, %s29_s24, [#allocation6]  }
  0x23   :  { %263 = dma.done.wait [#allocation3], 1280  }
  0x24   :  { %264 = vsyncadd [#allocation3], 4294966016 }
  0x25   :  { %265 = dma.done.wait [#allocation6], 128  }
  0x26   :  { %266 = vsyncadd [#allocation6], 4294967168  ;;  %v38_v0 = vld [vmem:[#allocation2] sm:$0xff]  ;;  %v39_v1 = vld [vmem:[#allocation2 + $0x8] sm:$0xff]  ;;  %s273_s1 = smov [#allocation7]  }
  0x27   :  { %v40_v2 = vld [vmem:[#allocation2 + $0x10] sm:$0xff]  ;;  %v41_v3 = vld [vmem:[#allocation2 + $0x18] sm:$0xff]  ;;  %v42_v4 = vld [vmem:[#allocation2 + $0x20] sm:$0xff]  ;;  %s155_s6 = sshll.u32 %s273_s1, 4  ;;  %s156_s6 = int_to_ptr.vmem [resolvable:$true] %s155_s6 }
  0x28   :  { %v43_v5 = vld [vmem:[#allocation2 + $0x28] sm:$0xff]  ;;  %v44_v6 = vld [vmem:[#allocation2 + $0x30] sm:$0xff]  ;;  %v45_v7 = vld [vmem:[#allocation2 + $0x38] sm:$0xff]  ;;  %v59_v8 = vmax.f32 %v38_v0, %v42_v4  ;;  %s241_s7 = scalar_lea.vmem %s156_s6, 128  ;;  %p246_p3 = scmp.lt.s32.totalorder %s156_s6, %s156_s6 }
  0x29   :  { %v60_v9 = vmax.f32 %v39_v1, %v43_v5  ;;  %v46_v10 = vld [vmem:[#allocation2 + $0x40] sm:$0xff]  ;;  %v47_v11 = vld [vmem:[#allocation2 + $0x48] sm:$0xff]  ;;  %v61_v12 = vmax.f32 %v40_v2, %v44_v6  ;;  %v62_v13 = vmax.f32 %v41_v3, %v45_v7  ;;  %v48_v33 = vld [vmem:[#allocation5] sm:$0xff]  ;;  %p242_p2 = scmp.ne.s32.totalorder %s156_s6, %s241_s7  ;;  %p247_p4 = scmp.lt.s32.totalorder %s241_s7, %s241_s7 }
  0x2a   :  { %v63_v14 = vmax.f32 %v59_v8, %v46_v10  ;;  %vm49_vm0 = vcmp.eq.s32.totalorder %v48_v33, 0  ;;  %vm50_vm1 = vcmp.eq.s32.totalorder %v48_v33, 1  ;;  %vm51_vm2 = vcmp.eq.s32.totalorder %v48_v33, 2 }
  0x2b   :  { %v64_v15 = vmax.f32 %v60_v9, %v47_v11  ;;  %v66_v16 = vmax.f32 %v61_v12, %v62_v13  ;;  %vm52_vm3 = vcmp.eq.s32.totalorder %v48_v33, 3  ;;  %vm53_vm4 = vcmp.eq.s32.totalorder %v48_v33, 4  ;;  %p248_p5 = por %p247_p4, %p246_p3 }
  0x2c   :  { %vm54_vm5 = vcmp.eq.s32.totalorder %v48_v33, 5  ;;  %vm55_vm6 = vcmp.eq.s32.totalorder %v48_v33, 6  ;;  %vm56_vm7 = vcmp.eq.s32.totalorder %v48_v33, 7  ;;  %vm57_vm8 = vcmp.eq.s32.totalorder %v48_v33, 8 }
  0x2d   :  { %v65_v17 = vmax.f32 %v63_v14, %v64_v15  ;;  %vm58_vm9 = vcmp.eq.s32.totalorder %v48_v33, 9  ;;  %p249_p6 = pnand %p248_p5, %p242_p2 }
  0x2f   :  { %v67_v18 = vmax.f32 %v65_v17, %v66_v16 }
  0x31   :  { %v68_v19 = vsub.f32 %v38_v0, %v67_v18  ;;  %v69_v20 = vsub.f32 %v39_v1, %v67_v18  ;;  %v70_v21 = vsub.f32 %v40_v2, %v67_v18  ;;  %v71_v22 = vsub.f32 %v41_v3, %v67_v18 }
  0x32   :  { %v72_v23 = vsub.f32 %v42_v4, %v67_v18  ;;  %v73_v26 = vsub.f32 %v43_v5, %v67_v18  ;;  %v74_v29 = vsub.f32 %v44_v6, %v67_v18  ;;  %v75_v31 = vsub.f32 %v45_v7, %v67_v18 }
  0x33   :  { %v78_v24 = vmul.f32 1.442695, %v68_v19  ;;  %v80_v25 = vmul.f32 1.442695, %v69_v20  ;;  %v82_v27 = vmul.f32 1.442695, %v70_v21  ;;  %v76_v34 = vsub.f32 %v46_v10, %v67_v18 }
  0x34   :  { %v84_v28 = vmul.f32 1.442695, %v71_v22  ;;  %v86_v30 = vmul.f32 1.442695, %v72_v23  ;;  %v88_v32 = vmul.f32 1.442695, %v73_v26  ;;  %v77_v36 = vsub.f32 %v47_v11, %v67_v18 }
  0x35   :  { %171 = vpow2.f32 %v78_v24  ;;  %v90_v35 = vmul.f32 1.442695, %v74_v29  ;;  %v92_v37 = vmul.f32 1.442695, %v75_v31  ;;  %v94_v38 = vmul.f32 1.442695, %v76_v34 }
  0x36   :  { %173 = vpow2.f32 %v80_v25  ;;  %v96_v41 = vmul.f32 1.442695, %v77_v36  ;;  %v137_v20 = vlaneseq }
  0x37   :  { %175 = vpow2.f32 %v82_v27 }
  0x38   :  { %177 = vpow2.f32 %v84_v28  ;;  %v138_v22 = vshrl.u32 %v137_v20, 7  ;;  %v143_v24 = vand.u32 127, %v137_v20 }
  0x39   :  { %179 = vpow2.f32 %v86_v30 }
  0x3a   :  { %181 = vpow2.f32 %v88_v32  ;;  %v139_v23 = vmul.u32 128, %v138_v22 }
  0x3b   :  { %183 = vpow2.f32 %v90_v35 }
  0x3c   :  { %185 = vpow2.f32 %v92_v37  ;;  %v144_v25 = vadd.s32 %v143_v24, %v139_v23 }
  0x3d   :  { %187 = vpow2.f32 %v94_v38 }
  0x3e   :  { %189 = vpow2.f32 %v96_v41  ;;  %vm145_vm10 = vcmp.lt.s32.totalorder %v144_v25, 300 }
  0x3f   :  { %v172_v39 = vpop.eup %171 }
  0x40   :  { %v174_v40 = vpop.eup %173  ;;  %v107_v42 = vsel %vm49_vm0, %v172_v39, 0.0 }
  0x41   :  { %v176_v43 = vpop.eup %175  ;;  %v98_v44 = vadd.f32 %v174_v40, %v172_v39  ;;  %v108_v45 = vsel %vm50_vm1, %v174_v40, 0.0 }
  0x42   :  { %v178_v46 = vpop.eup %177  ;;  %v109_v47 = vsel %vm51_vm2, %v176_v43, 0.0  ;;  %v117_v48 = vadd.f32 %v108_v45, %v107_v42 }
  0x43   :  { %v99_v49 = vadd.f32 %v176_v43, %v98_v44  ;;  %v110_v50 = vsel %vm52_vm3, %v178_v46, 0.0  ;;  %v180_v51 = vpop.eup %179 }
  0x44   :  { %v118_v52 = vadd.f32 %v117_v48, %v109_v47  ;;  %v111_v54 = vsel %vm53_vm4, %v180_v51, 0.0  ;;  %v182_v55 = vpop.eup %181 }
  0x45   :  { %v100_v53 = vadd.f32 %v178_v46, %v99_v49  ;;  %v112_v58 = vsel %vm54_vm5, %v182_v55, 0.0  ;;  %v184_v59 = vpop.eup %183 }
  0x46   :  { %v119_v56 = vadd.f32 %v118_v52, %v110_v50  ;;  %v186_v62 = vpop.eup %185  ;;  %v113_v1 = vsel %vm55_vm6, %v184_v59, 0.0 }
  0x47   :  { %v101_v57 = vadd.f32 %v180_v51, %v100_v53  ;;  %v188_v2 = vpop.eup %187  ;;  %v114_v7 = vsel %vm56_vm7, %v186_v62, 0.0 }
  0x48   :  { %v120_v60 = vadd.f32 %v119_v56, %v111_v54  ;;  %v190_v4 = vpop.eup %189  ;;  %v115_v10 = vsel %vm57_vm8, %v188_v2, 0.0 }
  0x49   :  { %v102_v61 = vadd.f32 %v182_v55, %v101_v57  ;;  %v116_v12 = vsel %vm58_vm9, %v190_v4, 0.0 }
  0x4a   :  { %v121_v63 = vadd.f32 %v120_v60, %v112_v58 }
  0x4b   :  { %v103_v0 = vadd.f32 %v184_v59, %v102_v61 }
  0x4c   :  { %v122_v5 = vadd.f32 %v121_v63, %v113_v1 }
  0x4d   :  { %v104_v3 = vadd.f32 %v186_v62, %v103_v0 }
  0x4e   :  { %v123_v9 = vadd.f32 %v122_v5, %v114_v7 }
  0x4f   :  { %v105_v6 = vadd.f32 %v188_v2, %v104_v3 }
  0x50   :  { %v124_v11 = vadd.f32 %v123_v9, %v115_v10 }
  0x51   :  { %v106_v8 = vadd.f32 %v190_v4, %v105_v6 }
  0x52   :  { %v125_v13 = vadd.f32 %v124_v11, %v116_v12 }
  0x53   :  { %191 = vrcp.f32 %v106_v8 }
  0x5d   :  { %v192_v14 = vpop.eup %191 }
  0x5e   :  { %v127_v15 = vmul.f32 %v192_v14, %v125_v13 }
  0x60   :  { %v128_v16 = vsub.f32 1.5, %v127_v15 }
  0x62   :  { %193 = vlog2.f32 %v128_v16 }
  0x6c   :  { %v194_v17 = vpop.eup %193 }
  0x6d   :  { %v130_v18 = vmul.f32 0.6931472, %v194_v17 }
  0x6f   :  { %v131_v19 = vmul.f32 0.9, %v130_v18 }
  0x71   :  { %v132_v21 = vmul.f32 1.442695, %v131_v19 }
  0x73   :  { %195 = vpow2.f32 %v132_v21 }
  0x7d   :  { %v196_v26 = vpop.eup %195 }
  0x7e   :  { %v165_v27 = vadd.f32 -0.5358867, %v196_v26 }
  0x80   :  { %v135_v28 = vmul.f32 1.1111112, %v165_v27 }
  0x82   :  { %v146_v29 = vsel %vm145_vm10, %v135_v28, 0.0 }
  0x83   :  { %148 = vst [vmem:[#allocation7] sm:$0xff] %v146_v29 }
  0x84   :  { %252 = shalt.err (!%p249_p6)
}
  0x85   :  { %s253_s10 = scalar_lea.hbm %s327_s2, 128 }
  0x86   :  { %p254_p7 = scmp.ne.s32.totalorder %s327_s2, %s253_s10  ;;  %p257_p8 = scmp.lt.u32.totalorder %s253_s10, %s327_s2 }
  0x88   :  { %p259_p9 = pnand %p257_p8, %p254_p7 }
  0x8a   :  { %262 = shalt.err (!%p259_p9)
}
  0x8b   :  { %158 = dma.vmem_to_hbm [thread:$0]  %s156_s6, 128, %s327_s2, [#allocation4]  }
  0x8c   :  { %267 = dma.done.wait [#allocation4], 128  }
  0x8d   :  { %268 = vsyncadd [#allocation4], 4294967168 }
  0x8e   :  { %162 = vsyncpa [#allocation3], 1 }
  0x8f   :  { %163 = vsyncpa [#allocation6], 1 }
  0x90   :  { %164 = vsyncpa [#allocation4], 1 }

</bundles_post_ra>
